<compile_context>
chip_gen: v5e
topology: v5e:2x2
jax: 0.10.0
libtpu: 0.0.40
codegen_flags: <defaults>
</compile_context>

<pallas_src>
import functools

import jax
import jax.numpy as jnp
from jax.experimental import pallas as pl
from jax.experimental.pallas import tpu as pltpu


def _round_up(x, m):
    return (x + m - 1) // m * m


def _mlp_soft_ll_kernel(x_ref,        # (tile_n, i_size)    compute_dtype
                        enc_w_ref,    # (i_size, size)      compute_dtype
                        enc_b_ref,    # (1, size)           f32
                        comp_w_ref,   # (size, depth*size)  compute_dtype
                        comp_b_ref,   # (1, depth*size)     f32
                        scale_ref,    # (depth, depth*size) f32; row k = s[:,k] per group
                        dec_w_ref,    # (size, 128)         compute_dtype (col 0 real)
                        dec_b_ref,    # (1, 128)             f32          (col 0 real)
                        out_ref,      # (tile_n, 128)        f32
                        *, depth, size, compute_dtype):
    # Encoder: MXU matmul with f32 accumulation, bias added in f32.
    h = jnp.dot(x_ref[...], enc_w_ref[...],
                preferred_element_type=jnp.float32) + enc_b_ref[...]

    # Soft layer mixture.  All `depth` component Linears are evaluated with a
    # single lane-dense matmul per k; the per-(j,k) mixture weight is applied
    # as one VPU multiply by a precomputed scale row; the `depth` groups of
    # `size` lanes are summed with XLU lane rolls + VPU adds.
    # TODO(synk): switch the k-loop to lax.fori_loop(unroll=True) if depth
    # ever grows past ~6 (vreg pressure from full static unrolling).
    for k in range(depth):
        y = jnp.dot(h.astype(compute_dtype), comp_w_ref[...],
                    preferred_element_type=jnp.float32)        # (tile_n, depth*size)
        y = jnp.maximum(y + comp_b_ref[...], 0.0)              # ReLU, f32
        y = y * scale_ref[k:k + 1, :]                          # s[j,k] per lane group
        acc = y
        for g in range(1, depth):
            acc = acc + pltpu.roll(y, shift=g * size, axis=1)  # XLU rotate (free slot)
        h = acc[:, :size]                                      # group sum -> (tile_n, size)

    # Decoder, padded to a lane-dense 128-wide slab; only column 0 is real.
    out_ref[...] = jnp.dot(h.astype(compute_dtype), dec_w_ref[...],
                           preferred_element_type=jnp.float32) + dec_b_ref[...]


def mlp_soft_ll_forward(x, structure_t, enc_w, enc_b, comp_w, comp_b,
                        dec_w, dec_b, *, compute_dtype=jnp.float32,
                        max_tile_n=512):
    """MLPSoftLL.forward for one task.

    x            : (n, i_size)
    structure_t  : (depth, depth) raw structure for the task (pre-softmax)
    enc_w/enc_b  : (i_size, size), (1, size)          -- (in, out) layout
    comp_w/comp_b: (depth, size, size), (depth, 1, size)
    dec_w/dec_b  : (size, 1), (1, 1)
    compute_dtype: dtype fed to the MXU (f32 or bf16); accumulation is f32.
    """
    depth = structure_t.shape[0]
    n, i_size = x.shape
    size = enc_w.shape[1]
    out_w = 128   # lane-dense output slab width; column 0 holds the result

    # ---- tiny glue ops done once in the wrapper --------------------------
    # Column-wise softmax of the structure matrix (dim=0 in the PyTorch code).
    s = jax.nn.softmax(structure_t.astype(jnp.float32), axis=0)     # (depth, depth)
    # Row k of `scale` = s[:, k] repeated across each `size`-lane group.
    scale = jnp.repeat(s.T, size, axis=1)                           # (depth, depth*size)

    # Fuse the depth component Linears into one lane-dense RHS:
    #   column block j of comp_w_cat == comp_w[j]  (in, out layout).
    comp_w_cat = jnp.transpose(comp_w, (1, 0, 2)).reshape(size, depth * size)
    comp_b_cat = comp_b.reshape(1, depth * size)

    # Pad the decoder to 128 output lanes (zeros except column 0) so the final
    # store is an unmasked lane-dense vst; column 0 is sliced out below.
    dec_w_pad = jnp.zeros((size, out_w), jnp.float32).at[:, :1].set(dec_w)
    dec_b_pad = jnp.zeros((1, out_w), jnp.float32).at[:, :1].set(dec_b)

    # ---- batch tiling -----------------------------------------------------
    tile_n = min(max_tile_n, _round_up(n, 8))
    n_pad = _round_up(n, tile_n)
    if n_pad != n:
        x = jnp.pad(x, ((0, n_pad - n), (0, 0)))
    grid = (n_pad // tile_n,)

    # ---- dtype prep: matmul inputs in compute_dtype, everything else f32 ---
    x_c = x.astype(compute_dtype)
    enc_w_c = enc_w.astype(compute_dtype)
    comp_w_c = comp_w_cat.astype(compute_dtype)
    dec_w_c = dec_w_pad.astype(compute_dtype)
    enc_b_f = enc_b.astype(jnp.float32)
    comp_b_f = comp_b_cat.astype(jnp.float32)

    resident = lambda i: (0, 0)   # weights: same block every grid step (stay resident)

    kernel = functools.partial(_mlp_soft_ll_kernel, depth=depth, size=size,
                               compute_dtype=compute_dtype)

    out_pad = pl.pallas_call(
        kernel,
        out_shape=jax.ShapeDtypeStruct((n_pad, out_w), jnp.float32),
        grid_spec=pltpu.PrefetchScalarGridSpec(
            num_scalar_prefetch=0,
            grid=grid,
            in_specs=[
                pl.BlockSpec((tile_n, i_size), lambda i: (i, 0)),   # x tile
                pl.BlockSpec((i_size, size), resident),             # enc_w
                pl.BlockSpec((1, size), resident),                  # enc_b
                pl.BlockSpec((size, depth * size), resident),       # comp_w (fused)
                pl.BlockSpec((1, depth * size), resident),          # comp_b (fused)
                pl.BlockSpec((depth, depth * size), resident),      # mixture scale rows
                pl.BlockSpec((size, out_w), resident),              # dec_w (padded)
                pl.BlockSpec((1, out_w), resident),                 # dec_b (padded)
            ],
            out_specs=pl.BlockSpec((tile_n, out_w), lambda i: (i, 0)),
        ),
        compiler_params=pltpu.CompilerParams(
            # Batch axis is embarrassingly parallel -> shards grid steps across
            # both TensorCores on v7x; harmless on v5e/v6e.  At these sizes the
            # resident weights (< 100 KiB) plus double-buffered activation
            # tiles fit the default scoped VMEM on every generation (incl.
            # v7x's 64 MiB physical VMEM), so no explicit vmem_limit_bytes.
            dimension_semantics=("parallel",),
        ),
    )(x_c, enc_w_c, enc_b_f, comp_w_c, comp_b_f, scale, dec_w_c, dec_b_pad)

    return out_pad[:n, :1]


def _reference_forward(x, structure_t, enc_w, enc_b, comp_w, comp_b,
                       dec_w, dec_b):
    s = jax.nn.softmax(structure_t, axis=0)
    depth = structure_t.shape[0]
    h = x @ enc_w + enc_b
    for k in range(depth):
        acc = jnp.zeros_like(h)
        for j in range(depth):
            acc = acc + s[j, k] * jax.nn.relu(h @ comp_w[j] + comp_b[j])
        h = acc
    return h @ dec_w + dec_b


if __name__ == "__main__":
    # Small shapes consistent with the module (pixel-MNIST-ish flattened input).
    i_size = 16    # input features
    size = 32      # hidden size
    depth = 4      # number of shared modules / soft layers
    num_tasks = 3
    task_id = 1

    key = jax.random.PRNGKey(0)
    keys = jax.random.split(key, 10)

    def uinit(k, shape, fan_in):
        bound = 1.0 / jnp.sqrt(jnp.float32(fan_in))
        return jax.random.uniform(k, shape, jnp.float32, -bound, bound)

    # Parameters (deterministic synthetic init, PyTorch-Linear-style bounds).
    enc_w = uinit(keys[0], (i_size, size), i_size)              # (in, out)
    enc_b = uinit(keys[1], (1, size), i_size)
    comp_w = uinit(keys[2], (depth, size, size), size)
    comp_b = uinit(keys[3], (depth, 1, size), size)
    dec_w = uinit(keys[4], (size, 1), size)
    dec_b = uinit(keys[5], (1, 1), size)
    # structure: nn.Parameter(torch.ones(depth, depth)) per task; perturb a bit
    # so the softmax is non-trivial but deterministic.
    structure = jnp.ones((num_tasks, depth, depth), jnp.float32) \
        + 0.1 * jax.random.normal(keys[6], (num_tasks, depth, depth))

    # --- small batch, f32 compute: tight check against the reference ------
    n_small = 8
    x_small = jax.random.normal(keys[7], (n_small, i_size), jnp.float32)
    out = mlp_soft_ll_forward(x_small, structure[task_id], enc_w, enc_b,
                              comp_w, comp_b, dec_w, dec_b,
                              compute_dtype=jnp.float32)
    out = jax.block_until_ready(out)
    ref = _reference_forward(x_small, structure[task_id], enc_w, enc_b,
                             comp_w, comp_b, dec_w, dec_b)
    assert out.shape == (n_small, 1)
    assert jnp.allclose(out, ref, atol=1e-5, rtol=1e-5)

    # --- larger ragged batch: exercises the batch grid + padding path -----
    n_big = 300
    x_big = jax.random.normal(keys[8], (n_big, i_size), jnp.float32)
    out_big = mlp_soft_ll_forward(x_big, structure[task_id], enc_w, enc_b,
                                  comp_w, comp_b, dec_w, dec_b,
                                  compute_dtype=jnp.float32, max_tile_n=128)
    out_big = jax.block_until_ready(out_big)
    ref_big = _reference_forward(x_big, structure[task_id], enc_w, enc_b,
                                 comp_w, comp_b, dec_w, dec_b)
    assert out_big.shape == (n_big, 1)
    assert jnp.allclose(out_big, ref_big, atol=1e-4, rtol=1e-4)

    # --- bf16 matmul inputs / f32 accumulation (v6e/v7x MXU fast path) -----
    out_bf16 = mlp_soft_ll_forward(x_big, structure[task_id], enc_w, enc_b,
                                   comp_w, comp_b, dec_w, dec_b,
                                   compute_dtype=jnp.bfloat16, max_tile_n=128)
    out_bf16 = jax.block_until_ready(out_bf16)
    assert out_bf16.shape == (n_big, 1)
    assert bool(jnp.all(jnp.isfinite(out_bf16)))
    assert jnp.allclose(out_bf16, ref_big, atol=5e-2, rtol=5e-2)

    print("KERNEL_OK")
</pallas_src>

<mosaic_0001>
module attributes {stable_mosaic.version = 11 : i64} {
  func.func @_mlp_soft_ll_kernel(%arg0: i32, %arg1: memref<8x16xf32, #tpu.memory_space<vmem>>, %arg2: memref<16x32xf32, #tpu.memory_space<vmem>>, %arg3: memref<1x32xf32, #tpu.memory_space<vmem>>, %arg4: memref<32x128xf32, #tpu.memory_space<vmem>>, %arg5: memref<1x128xf32, #tpu.memory_space<vmem>>, %arg6: memref<4x128xf32, #tpu.memory_space<vmem>>, %arg7: memref<32x128xf32, #tpu.memory_space<vmem>>, %arg8: memref<1x128xf32, #tpu.memory_space<vmem>>, %arg9: memref<8x128xf32, #tpu.memory_space<vmem>>) attributes {dimension_semantics = [#tpu.dimension_semantics<parallel>], iteration_bounds = array<i64: 1>, scalar_prefetch = 0 : i64, scratch_operands = 0 : i64, tpu.core_type = #tpu.core_type<tc>, window_params = [{transform_indices = @transform_0, window_bounds = array<i64: 8, 16>}, {pipeline_mode = #tpu.pipeline_mode<synchronous>, transform_indices = @transform_1, window_bounds = array<i64: 16, 32>}, {pipeline_mode = #tpu.pipeline_mode<synchronous>, transform_indices = @transform_2, window_bounds = array<i64: 1, 32>}, {pipeline_mode = #tpu.pipeline_mode<synchronous>, transform_indices = @transform_3, window_bounds = array<i64: 32, 128>}, {pipeline_mode = #tpu.pipeline_mode<synchronous>, transform_indices = @transform_4, window_bounds = array<i64: 1, 128>}, {pipeline_mode = #tpu.pipeline_mode<synchronous>, transform_indices = @transform_5, window_bounds = array<i64: 4, 128>}, {pipeline_mode = #tpu.pipeline_mode<synchronous>, transform_indices = @transform_6, window_bounds = array<i64: 32, 128>}, {pipeline_mode = #tpu.pipeline_mode<synchronous>, transform_indices = @transform_7, window_bounds = array<i64: 1, 128>}, {transform_indices = @transform_8, window_bounds = array<i64: 8, 128>}]} {
    %c0 = arith.constant 0 : index
    %c0_0 = arith.constant 0 : index
    %0 = vector.load %arg1[%c0, %c0_0] : memref<8x16xf32, #tpu.memory_space<vmem>>, vector<8x16xf32>
    %c0_1 = arith.constant 0 : index
    %c0_2 = arith.constant 0 : index
    %1 = vector.load %arg2[%c0_1, %c0_2] : memref<16x32xf32, #tpu.memory_space<vmem>>, vector<16x32xf32>
    %cst = arith.constant dense<0.000000e+00> : vector<8x32xf32>
    %2 = tpu.matmul %0, %1, %cst {dimension_numbers = #tpu.dot_dimension_numbers<[1], [0], [0], [1], [0, 0, 1, 1], [], []>} : vector<8x16xf32>, vector<16x32xf32>, vector<8x32xf32> -> vector<8x32xf32>
    %c0_3 = arith.constant 0 : index
    %c0_4 = arith.constant 0 : index
    %3 = vector.load %arg3[%c0_3, %c0_4] : memref<1x32xf32, #tpu.memory_space<vmem>>, vector<1x32xf32>
    %4 = vector.broadcast %3 : vector<1x32xf32> to vector<8x32xf32>
    %5 = arith.addf %2, %4 : vector<8x32xf32>
    %c0_5 = arith.constant 0 : index
    %c0_6 = arith.constant 0 : index
    %6 = vector.load %arg4[%c0_5, %c0_6] : memref<32x128xf32, #tpu.memory_space<vmem>>, vector<32x128xf32>
    %cst_7 = arith.constant dense<0.000000e+00> : vector<8x128xf32>
    %7 = tpu.matmul %5, %6, %cst_7 {dimension_numbers = #tpu.dot_dimension_numbers<[1], [0], [0], [1], [0, 0, 1, 1], [], []>} : vector<8x32xf32>, vector<32x128xf32>, vector<8x128xf32> -> vector<8x128xf32>
    %c0_8 = arith.constant 0 : index
    %c0_9 = arith.constant 0 : index
    %8 = vector.load %arg5[%c0_8, %c0_9] : memref<1x128xf32, #tpu.memory_space<vmem>>, vector<1x128xf32>
    %9 = vector.broadcast %8 : vector<1x128xf32> to vector<8x128xf32>
    %10 = arith.addf %7, %9 : vector<8x128xf32>
    %cst_10 = arith.constant 0.000000e+00 : f32
    %11 = vector.broadcast %cst_10 : f32 to vector<8x128xf32>
    %12 = arith.maximumf %10, %11 : vector<8x128xf32>
    %c0_11 = arith.constant 0 : index
    %c0_12 = arith.constant 0 : index
    %13 = vector.load %arg6[%c0_11, %c0_12] : memref<4x128xf32, #tpu.memory_space<vmem>>, vector<1x128xf32>
    %14 = vector.broadcast %13 : vector<1x128xf32> to vector<8x128xf32>
    %15 = arith.mulf %12, %14 : vector<8x128xf32>
    %c32_i32 = arith.constant 32 : i32
    %16 = tpu.dynamic_rotate %15 by %c32_i32 dim 1 : vector<8x128xf32>, i32 -> vector<8x128xf32>
    %17 = arith.addf %15, %16 : vector<8x128xf32>
    %c64_i32 = arith.constant 64 : i32
    %18 = tpu.dynamic_rotate %15 by %c64_i32 dim 1 : vector<8x128xf32>, i32 -> vector<8x128xf32>
    %19 = arith.addf %17, %18 : vector<8x128xf32>
    %c96_i32 = arith.constant 96 : i32
    %20 = tpu.dynamic_rotate %15 by %c96_i32 dim 1 : vector<8x128xf32>, i32 -> vector<8x128xf32>
    %21 = arith.addf %19, %20 : vector<8x128xf32>
    %22 = vector.extract_strided_slice %21 {offsets = [0, 0], sizes = [8, 32], strides = [1, 1]} : vector<8x128xf32> to vector<8x32xf32>
    %c0_13 = arith.constant 0 : index
    %c0_14 = arith.constant 0 : index
    %23 = vector.load %arg4[%c0_13, %c0_14] : memref<32x128xf32, #tpu.memory_space<vmem>>, vector<32x128xf32>
    %cst_15 = arith.constant dense<0.000000e+00> : vector<8x128xf32>
    %24 = tpu.matmul %22, %23, %cst_15 {dimension_numbers = #tpu.dot_dimension_numbers<[1], [0], [0], [1], [0, 0, 1, 1], [], []>} : vector<8x32xf32>, vector<32x128xf32>, vector<8x128xf32> -> vector<8x128xf32>
    %c0_16 = arith.constant 0 : index
    %c0_17 = arith.constant 0 : index
    %25 = vector.load %arg5[%c0_16, %c0_17] : memref<1x128xf32, #tpu.memory_space<vmem>>, vector<1x128xf32>
    %26 = vector.broadcast %25 : vector<1x128xf32> to vector<8x128xf32>
    %27 = arith.addf %24, %26 : vector<8x128xf32>
    %cst_18 = arith.constant 0.000000e+00 : f32
    %28 = vector.broadcast %cst_18 : f32 to vector<8x128xf32>
    %29 = arith.maximumf %27, %28 : vector<8x128xf32>
    %c1 = arith.constant 1 : index
    %c0_19 = arith.constant 0 : index
    %30 = vector.load %arg6[%c1, %c0_19] : memref<4x128xf32, #tpu.memory_space<vmem>>, vector<1x128xf32>
    %31 = vector.broadcast %30 : vector<1x128xf32> to vector<8x128xf32>
    %32 = arith.mulf %29, %31 : vector<8x128xf32>
    %c32_i32_20 = arith.constant 32 : i32
    %33 = tpu.dynamic_rotate %32 by %c32_i32_20 dim 1 : vector<8x128xf32>, i32 -> vector<8x128xf32>
    %34 = arith.addf %32, %33 : vector<8x128xf32>
    %c64_i32_21 = arith.constant 64 : i32
    %35 = tpu.dynamic_rotate %32 by %c64_i32_21 dim 1 : vector<8x128xf32>, i32 -> vector<8x128xf32>
    %36 = arith.addf %34, %35 : vector<8x128xf32>
    %c96_i32_22 = arith.constant 96 : i32
    %37 = tpu.dynamic_rotate %32 by %c96_i32_22 dim 1 : vector<8x128xf32>, i32 -> vector<8x128xf32>
    %38 = arith.addf %36, %37 : vector<8x128xf32>
    %39 = vector.extract_strided_slice %38 {offsets = [0, 0], sizes = [8, 32], strides = [1, 1]} : vector<8x128xf32> to vector<8x32xf32>
    %c0_23 = arith.constant 0 : index
    %c0_24 = arith.constant 0 : index
    %40 = vector.load %arg4[%c0_23, %c0_24] : memref<32x128xf32, #tpu.memory_space<vmem>>, vector<32x128xf32>
    %cst_25 = arith.constant dense<0.000000e+00> : vector<8x128xf32>
    %41 = tpu.matmul %39, %40, %cst_25 {dimension_numbers = #tpu.dot_dimension_numbers<[1], [0], [0], [1], [0, 0, 1, 1], [], []>} : vector<8x32xf32>, vector<32x128xf32>, vector<8x128xf32> -> vector<8x128xf32>
    %c0_26 = arith.constant 0 : index
    %c0_27 = arith.constant 0 : index
    %42 = vector.load %arg5[%c0_26, %c0_27] : memref<1x128xf32, #tpu.memory_space<vmem>>, vector<1x128xf32>
    %43 = vector.broadcast %42 : vector<1x128xf32> to vector<8x128xf32>
    %44 = arith.addf %41, %43 : vector<8x128xf32>
    %cst_28 = arith.constant 0.000000e+00 : f32
    %45 = vector.broadcast %cst_28 : f32 to vector<8x128xf32>
    %46 = arith.maximumf %44, %45 : vector<8x128xf32>
    %c2 = arith.constant 2 : index
    %c0_29 = arith.constant 0 : index
    %47 = vector.load %arg6[%c2, %c0_29] : memref<4x128xf32, #tpu.memory_space<vmem>>, vector<1x128xf32>
    %48 = vector.broadcast %47 : vector<1x128xf32> to vector<8x128xf32>
    %49 = arith.mulf %46, %48 : vector<8x128xf32>
    %c32_i32_30 = arith.constant 32 : i32
    %50 = tpu.dynamic_rotate %49 by %c32_i32_30 dim 1 : vector<8x128xf32>, i32 -> vector<8x128xf32>
    %51 = arith.addf %49, %50 : vector<8x128xf32>
    %c64_i32_31 = arith.constant 64 : i32
    %52 = tpu.dynamic_rotate %49 by %c64_i32_31 dim 1 : vector<8x128xf32>, i32 -> vector<8x128xf32>
    %53 = arith.addf %51, %52 : vector<8x128xf32>
    %c96_i32_32 = arith.constant 96 : i32
    %54 = tpu.dynamic_rotate %49 by %c96_i32_32 dim 1 : vector<8x128xf32>, i32 -> vector<8x128xf32>
    %55 = arith.addf %53, %54 : vector<8x128xf32>
    %56 = vector.extract_strided_slice %55 {offsets = [0, 0], sizes = [8, 32], strides = [1, 1]} : vector<8x128xf32> to vector<8x32xf32>
    %c0_33 = arith.constant 0 : index
    %c0_34 = arith.constant 0 : index
    %57 = vector.load %arg4[%c0_33, %c0_34] : memref<32x128xf32, #tpu.memory_space<vmem>>, vector<32x128xf32>
    %cst_35 = arith.constant dense<0.000000e+00> : vector<8x128xf32>
    %58 = tpu.matmul %56, %57, %cst_35 {dimension_numbers = #tpu.dot_dimension_numbers<[1], [0], [0], [1], [0, 0, 1, 1], [], []>} : vector<8x32xf32>, vector<32x128xf32>, vector<8x128xf32> -> vector<8x128xf32>
    %c0_36 = arith.constant 0 : index
    %c0_37 = arith.constant 0 : index
    %59 = vector.load %arg5[%c0_36, %c0_37] : memref<1x128xf32, #tpu.memory_space<vmem>>, vector<1x128xf32>
    %60 = vector.broadcast %59 : vector<1x128xf32> to vector<8x128xf32>
    %61 = arith.addf %58, %60 : vector<8x128xf32>
    %cst_38 = arith.constant 0.000000e+00 : f32
    %62 = vector.broadcast %cst_38 : f32 to vector<8x128xf32>
    %63 = arith.maximumf %61, %62 : vector<8x128xf32>
    %c3 = arith.constant 3 : index
    %c0_39 = arith.constant 0 : index
    %64 = vector.load %arg6[%c3, %c0_39] : memref<4x128xf32, #tpu.memory_space<vmem>>, vector<1x128xf32>
    %65 = vector.broadcast %64 : vector<1x128xf32> to vector<8x128xf32>
    %66 = arith.mulf %63, %65 : vector<8x128xf32>
    %c32_i32_40 = arith.constant 32 : i32
    %67 = tpu.dynamic_rotate %66 by %c32_i32_40 dim 1 : vector<8x128xf32>, i32 -> vector<8x128xf32>
    %68 = arith.addf %66, %67 : vector<8x128xf32>
    %c64_i32_41 = arith.constant 64 : i32
    %69 = tpu.dynamic_rotate %66 by %c64_i32_41 dim 1 : vector<8x128xf32>, i32 -> vector<8x128xf32>
    %70 = arith.addf %68, %69 : vector<8x128xf32>
    %c96_i32_42 = arith.constant 96 : i32
    %71 = tpu.dynamic_rotate %66 by %c96_i32_42 dim 1 : vector<8x128xf32>, i32 -> vector<8x128xf32>
    %72 = arith.addf %70, %71 : vector<8x128xf32>
    %73 = vector.extract_strided_slice %72 {offsets = [0, 0], sizes = [8, 32], strides = [1, 1]} : vector<8x128xf32> to vector<8x32xf32>
    %c0_43 = arith.constant 0 : index
    %c0_44 = arith.constant 0 : index
    %74 = vector.load %arg7[%c0_43, %c0_44] : memref<32x128xf32, #tpu.memory_space<vmem>>, vector<32x128xf32>
    %cst_45 = arith.constant dense<0.000000e+00> : vector<8x128xf32>
    %75 = tpu.matmul %73, %74, %cst_45 {dimension_numbers = #tpu.dot_dimension_numbers<[1], [0], [0], [1], [0, 0, 1, 1], [], []>} : vector<8x32xf32>, vector<32x128xf32>, vector<8x128xf32> -> vector<8x128xf32>
    %c0_46 = arith.constant 0 : index
    %c0_47 = arith.constant 0 : index
    %76 = vector.load %arg8[%c0_46, %c0_47] : memref<1x128xf32, #tpu.memory_space<vmem>>, vector<1x128xf32>
    %77 = vector.broadcast %76 : vector<1x128xf32> to vector<8x128xf32>
    %78 = arith.addf %75, %77 : vector<8x128xf32>
    %c0_48 = arith.constant 0 : index
    %c0_49 = arith.constant 0 : index
    %79 = vector.load %arg9[%c0_48, %c0_49] : memref<8x128xf32, #tpu.memory_space<vmem>>, vector<8x128xf32>
    tpu.vector_store %arg9[%c0_48, %c0_49], %78 {strides = array<i32>} : memref<8x128xf32, #tpu.memory_space<vmem>>, vector<8x128xf32>,
    return
  }
  func.func @transform_0(%arg0: i32) -> (i32, i32) {
    %c0_i32 = arith.constant 0 : i32
    %c0_i32_0 = arith.constant 0 : i32
    return %arg0, %c0_i32 : i32, i32
  }
  func.func @transform_1(%arg0: i32) -> (i32, i32) {
    %c0_i32 = arith.constant 0 : i32
    %c0_i32_0 = arith.constant 0 : i32
    %c0_i32_1 = arith.constant 0 : i32
    return %c0_i32, %c0_i32_0 : i32, i32
  }
  func.func @transform_2(%arg0: i32) -> (i32, i32) {
    %c0_i32 = arith.constant 0 : i32
    %c0_i32_0 = arith.constant 0 : i32
    %c0_i32_1 = arith.constant 0 : i32
    return %c0_i32, %c0_i32_0 : i32, i32
  }
  func.func @transform_3(%arg0: i32) -> (i32, i32) {
    %c0_i32 = arith.constant 0 : i32
    %c0_i32_0 = arith.constant 0 : i32
    %c0_i32_1 = arith.constant 0 : i32
    return %c0_i32, %c0_i32_0 : i32, i32
  }
  func.func @transform_4(%arg0: i32) -> (i32, i32) {
    %c0_i32 = arith.constant 0 : i32
    %c0_i32_0 = arith.constant 0 : i32
    %c0_i32_1 = arith.constant 0 : i32
    return %c0_i32, %c0_i32_0 : i32, i32
  }
  func.func @transform_5(%arg0: i32) -> (i32, i32) {
    %c0_i32 = arith.constant 0 : i32
    %c0_i32_0 = arith.constant 0 : i32
    %c0_i32_1 = arith.constant 0 : i32
    return %c0_i32, %c0_i32_0 : i32, i32
  }
  func.func @transform_6(%arg0: i32) -> (i32, i32) {
    %c0_i32 = arith.constant 0 : i32
    %c0_i32_0 = arith.constant 0 : i32
    %c0_i32_1 = arith.constant 0 : i32
    return %c0_i32, %c0_i32_0 : i32, i32
  }
  func.func @transform_7(%arg0: i32) -> (i32, i32) {
    %c0_i32 = arith.constant 0 : i32
    %c0_i32_0 = arith.constant 0 : i32
    %c0_i32_1 = arith.constant 0 : i32
    return %c0_i32, %c0_i32_0 : i32, i32
  }
  func.func @transform_8(%arg0: i32) -> (i32, i32) {
    %c0_i32 = arith.constant 0 : i32
    %c0_i32_0 = arith.constant 0 : i32
    return %arg0, %c0_i32 : i32, i32
  }
}

</mosaic_0001>

<bundles_post_ra>
// kernel: tpu_custom_call.1
= control target key start
LH: loop header
LB: loop body
LE: loop exit
PB: predicated region body
PF: predicated region fallthrough
CT: control target
= control target key end

     0   :  { %13 = vsyncpa [#allocation3], 0  ;;  %s676_s0 = inlined_call_operand.hbm [shape: f32[8,16], index: 0, kind: input, shape index: {}]   ;;  %s677_s1 = inlined_call_operand.hbm [shape: f32[16,32], index: 1, kind: input, shape index: {}]   ;;  %s678_s2 = inlined_call_operand.hbm [shape: f32[1,32], index: 2, kind: input, shape index: {}]   ;;  %s679_s3 = inlined_call_operand.hbm [shape: f32[32,128], index: 3, kind: input, shape index: {}]   ;;  %s680_s4 = inlined_call_operand.hbm [shape: f32[1,128], index: 4, kind: input, shape index: {}]   ;;  %s681_s5 = inlined_call_operand.vmem [shape: f32[4,128], index: 5, kind: input, shape index: {}]   ;;  %s682_s6 = inlined_call_operand.hbm [shape: f32[32,128], index: 6, kind: input, shape index: {}]   ;;  %s683_s7 = inlined_call_operand.vmem [shape: f32[1,128], index: 7, kind: input, shape index: {}]   ;;  %s684_s8 = inlined_call_operand.hbm [shape: f32[8,128], index: 8, kind: output, shape index: {}]  }
   0x1   :  { %14 = vsyncpa [#allocation6], 0 }
   0x2   :  { %15 = vsyncpa [#allocation9], 0 }
   0x3   :  { %16 = vsyncpa [#allocation12], 0  ;;  %s33_s29 = sshll.u32 %s677_s1, 4  ;;  %s34_s29 = int_to_ptr.hbm [resolvable:$true] %s33_s29 }
   0x4   :  { %17 = vsyncpa [#allocation4], 0  ;;  %s557_s30 = smov [#allocation5]   ;;  %s57_s12 = sshll.u32 %s679_s3, 4  ;;  %s58_s12 = int_to_ptr.hbm [resolvable:$true] %s57_s12 }
   0x5   :  { %s35_s9 = sshll.u32 %s557_s30, 4  ;;  %s558_s13 = smov 128   ;;  %s36_s9 = int_to_ptr.vmem [resolvable:$true] %s35_s9 }
   0x6   :  { %s559_s14 = smov 8   ;;  %s560_s15 = smov [#allocation8]  }
   0x7   :  { %41 = dma.hbm_to_vmem [thread:$0]  %s34_s29, 256, %s36_s9, [#allocation6], %s558_s13, %s558_s13, %s559_s14  }
   0x8   :  { %s59_s16 = sshll.u32 %s560_s15, 4  ;;  %s23_s18 = sshll.u32 %s676_s0, 4  ;;  %s60_s16 = int_to_ptr.vmem [resolvable:$true] %s59_s16  ;;  %s24_s18 = int_to_ptr.hbm [resolvable:$true] %s23_s18 }
   0x9   :  { %65 = dma.hbm_to_vmem [thread:$0]  %s58_s12, 512, %s60_s16, [#allocation9], %s558_s13, %s558_s13, %s559_s14  }
   0xa   :  { %s47_s20 = sshll.u32 %s678_s2, 4  ;;  %s561_s21 = smov [#allocation2]   ;;  %s48_s20 = int_to_ptr.hbm [resolvable:$true] %s47_s20 }
   0xb   :  { %s25_s22 = sshll.u32 %s561_s21, 4  ;;  %s562_s23 = smov [#allocation7]   ;;  %s26_s22 = int_to_ptr.vmem [resolvable:$true] %s25_s22 }
   0xc   :  { %28 = dma.hbm_to_vmem [thread:$0]  %s24_s18, 128, %s26_s22, [#allocation3]  }
   0xd   :  { %s49_s24 = sshll.u32 %s562_s23, 4  ;;  %s71_s0 = sshll.u32 %s680_s4, 4  ;;  %s50_s24 = int_to_ptr.vmem [resolvable:$true] %s49_s24  ;;  %s72_s0 = int_to_ptr.hbm [resolvable:$true] %s71_s0 }
   0xe   :  { %52 = dma.hbm_to_vmem [thread:$0]  %s48_s20, 16, %s50_s24, [#allocation6]  }
   0xf   :  { %s83_s29 = sshll.u32 %s682_s6, 4  ;;  %s563_s30 = smov [#allocation10]   ;;  %s84_s29 = int_to_ptr.hbm [resolvable:$true] %s83_s29 }
  0x10   :  { %s73_s2 = sshll.u32 %s563_s30, 4  ;;  %s564_s9 = smov [#allocation11]   ;;  %s74_s2 = int_to_ptr.vmem [resolvable:$true] %s73_s2 }
  0x11   :  { %76 = dma.hbm_to_vmem [thread:$0]  %s72_s0, 16, %s74_s2, [#allocation9]  }
  0x12   :  { %s85_s10 = sshll.u32 %s564_s9, 4  ;;  %s86_s10 = int_to_ptr.vmem [resolvable:$true] %s85_s10 }
  0x13   :  { %91 = dma.hbm_to_vmem [thread:$0]  %s84_s29, 512, %s86_s10, [#allocation12], %s558_s13, %s558_s13, %s559_s14  }
  0x14   :  { %547 = dma.done.wait [#allocation3], 128  }
  0x15   :  { %548 = vsyncadd [#allocation3], 4294967168 }
  0x16   :  { %549 = dma.done.wait [#allocation6], 272  }
  0x17   :  { %550 = vsyncadd [#allocation6], 4294967024 }
  0x18   :  { %551 = dma.done.wait [#allocation9], 528  }
  0x19   :  { %552 = vsyncadd [#allocation9], 4294966768 }
  0x1a   :  { %553 = dma.done.wait [#allocation12], 512  }
  0x1b   :  { %554 = vsyncadd [#allocation12], 4294966784  ;;  %v120_v0 = vld [vmem:[#allocation5 + $0x8] sm:$0xff]  ;;  %v119_v1 = vld [vmem:[#allocation5] sm:$0xff]  ;;  %vm125_vm0 = vcmask 130048   ;;  %vm157_vm1 = vcmask 261120  }
  0x1c   :  { %v118_v2 = vld [vmem:[#allocation2] sm:$0xff]  ;;  %143 = vmatpush.msra.mxu0 %v120_v0  ;;  %v152_v3 = vld [vmem:[#allocation8 + $0x18] sm:$0xff]  ;;  %v151_v4 = vld [vmem:[#allocation8 + $0x10] sm:$0xff]  ;;  %s565_s11 = smov 96   ;;  %s566_s12 = smov 32  }
  0x1d   :  { %173 = vmatpush.msra.mxu1 %v152_v3  ;;  %209 = vmatpush.msra.mxu2 %v152_v3  ;;  %v150_v5 = vld [vmem:[#allocation8 + $0x8] sm:$0xff]  ;;  %v149_v6 = vld [vmem:[#allocation8] sm:$0xff]  ;;  %v372_v7 = vld [vmem:[#allocation7] ss:$0 sm:$0xff]  ;;  %s567_s13 = smov 64   ;;  %s568_s19 = smov [#allocation13]  }
  0x1e   :  { %144 = vmatpush.msra.mxu0 %v119_v1  ;;  %245 = vmatpush.msra.mxu3 %v152_v3  ;;  %v373_v10 = vld [vmem:[#allocation10] ss:$0 sm:$0xff]  ;;  %v374_v13 = vld [vmem:[%s681_s5] ss:$0 sm:$0xff]  ;;  %v375_v24 = vld [vmem:[%s681_s5 + $0x1] ss:$0 sm:$0xff] }
  0x1f   :  { %354 = vmatmul.msk.f32.vlgmr.msra.gmra.mxu0 %vm125_vm0, %v118_v2  ;;  %174 = vmatpush.msra.mxu1 %v151_v4  ;;  %v376_v35 = vld [vmem:[%s681_s5 + $0x2] ss:$0 sm:$0xff]  ;;  %v377_v46 = vld [vmem:[%s681_s5 + $0x3] ss:$0 sm:$0xff]  ;;  %v305_v49 = vld [vmem:[#allocation11 + $0x18] sm:$0xff]  ;;  %s339_s20 = sshll.u32 %s568_s19, 4  ;;  %s340_s20 = int_to_ptr.vmem [resolvable:$true] %s339_s20 }
  0x20   :  { %210 = vmatpush.msra.mxu2 %v151_v4  ;;  %246 = vmatpush.msra.mxu3 %v151_v4  ;;  %v304_v50 = vld [vmem:[#allocation11 + $0x10] sm:$0xff]  ;;  %v303_v51 = vld [vmem:[#allocation11 + $0x8] sm:$0xff]  ;;  %v302_v52 = vld [vmem:[#allocation11] sm:$0xff]  ;;  %s341_s23 = sshll.u32 %s684_s8, 4  ;;  %s342_s23 = int_to_ptr.hbm [resolvable:$true] %s341_s23 }
  0x21   :  { %281 = vmatpush.msrb.mxu0 %v152_v3  ;;  %175 = vmatpush.msra.mxu1 %v150_v5  ;;  %v378_v59 = vld [vmem:[%s683_s7] ss:$0 sm:$0xff] }
  0x22   :  { %211 = vmatpush.msra.mxu2 %v150_v5  ;;  %247 = vmatpush.msra.mxu3 %v150_v5 }
  0x23   :  { %282 = vmatpush.msrb.mxu0 %v151_v4  ;;  %176 = vmatpush.msra.mxu1 %v149_v6 }
  0x24   :  { %212 = vmatpush.msra.mxu2 %v149_v6  ;;  %248 = vmatpush.msra.mxu3 %v149_v6 }
  0x25   :  { %283 = vmatpush.msrb.mxu0 %v150_v5  ;;  %325 = vmatpush.msrb.mxu1 %v305_v49 }
  0x27   :  { %284 = vmatpush.msrb.mxu0 %v149_v6  ;;  %326 = vmatpush.msrb.mxu1 %v304_v50 }
  0x29   :  { %327 = vmatpush.msrb.mxu1 %v303_v51 }
  0x2b   :  { %328 = vmatpush.msrb.mxu1 %v302_v52 }
  0x9c   :  { %v146_v8 = vpop.f32.mrf.mxu0 }
  0x9d   :  { %v147_v9 = vadd.f32 %v372_v7, %v146_v8 }
  0x9f   :  { %355 = vmatmul.msk.f32.vlgmr.msra.gmra.mxu1 %vm157_vm1, %v147_v9 }
 0x11c   :  { %v178_v11 = vpop.f32.mrf.mxu1 }
 0x11d   :  { %v179_v12 = vadd.f32 %v373_v10, %v178_v11 }
 0x11f   :  { %v181_v14 = vmax.f32 %v179_v12, 0.0 }
 0x121   :  { %v184_v15 = vmul.f32 %v374_v13, %v181_v14 }
 0x123   :  { %191 = vrot.lane.b32.xlu1 %v184_v15, %s565_s11  ;;  %185 = vrot.lane.b32.xlu0 %v184_v15, %s566_s12 }
 0x12b   :  { %188 = vrot.lane.b32.xlu0 %v184_v15, %s567_s13 }
 0x195   :  { %v186_v16 = vpop.permute.xlu0 %185  ;;  %v192_v20 = vpop.permute.xlu1 %191 }
 0x196   :  { %v187_v17 = vadd.f32 %v186_v16, %v184_v15 }
 0x19d   :  { %v189_v18 = vpop.permute.xlu0 %188 }
 0x19e   :  { %v190_v19 = vadd.f32 %v189_v18, %v187_v17 }
 0x1a0   :  { %v193_v21 = vadd.f32 %v192_v20, %v190_v19 }
 0x1a2   :  { %356 = vmatmul.msk.f32.vlgmr.msra.gmra.mxu2 %vm157_vm1, %v193_v21 }
 0x225   :  { %v214_v22 = vpop.f32.mrf.mxu2 }
 0x226   :  { %v215_v23 = vadd.f32 %v373_v10, %v214_v22 }
 0x228   :  { %v217_v25 = vmax.f32 %v215_v23, 0.0 }
 0x22a   :  { %v220_v26 = vmul.f32 %v375_v24, %v217_v25 }
 0x22c   :  { %224 = vrot.lane.b32.xlu2 %v220_v26, %s567_s13  ;;  %221 = vrot.lane.b32.xlu1 %v220_v26, %s566_s12 }
 0x234   :  { %227 = vrot.lane.b32.xlu2 %v220_v26, %s565_s11 }
 0x286   :  { %v225_v27 = vpop.permute.xlu2 %224 }
 0x28e   :  { %v228_v31 = vpop.permute.xlu2 %227 }
 0x29e   :  { %v222_v28 = vpop.permute.xlu1 %221 }
 0x29f   :  { %v223_v29 = vadd.f32 %v222_v28, %v220_v26 }
 0x2a1   :  { %v226_v30 = vadd.f32 %v225_v27, %v223_v29 }
 0x2a3   :  { %v229_v32 = vadd.f32 %v228_v31, %v226_v30 }
 0x2a5   :  { %357 = vmatmul.msk.f32.vlgmr.msra.gmra.mxu3 %vm157_vm1, %v229_v32 }
 0x328   :  { %v250_v33 = vpop.f32.mrf.mxu3 }
 0x329   :  { %v251_v34 = vadd.f32 %v373_v10, %v250_v33 }
 0x32b   :  { %v253_v36 = vmax.f32 %v251_v34, 0.0 }
 0x32d   :  { %v256_v37 = vmul.f32 %v376_v35, %v253_v36 }
 0x32f   :  { %263 = vrot.lane.b32.xlu2 %v256_v37, %s565_s11  ;;  %260 = vrot.lane.b32.xlu1 %v256_v37, %s567_s13 }
 0x330   :  { %257 = vrot.lane.b32.xlu0 %v256_v37, %s566_s12 }
 0x389   :  { %v264_v42 = vpop.permute.xlu2 %263 }
 0x3a1   :  { %v261_v40 = vpop.permute.xlu1 %260 }
 0x3a2   :  { %v258_v38 = vpop.permute.xlu0 %257 }
 0x3a3   :  { %v259_v39 = vadd.f32 %v258_v38, %v256_v37 }
 0x3a5   :  { %v262_v41 = vadd.f32 %v261_v40, %v259_v39 }
 0x3a7   :  { %v265_v43 = vadd.f32 %v264_v42, %v262_v41 }
 0x3a9   :  { %358 = vmatmul.msk.f32.vlgmr.msrb.gmra.mxu0 %vm157_vm1, %v265_v43 }
 0x426   :  { %v286_v44 = vpop.f32.mrf.mxu0 }
 0x427   :  { %v287_v45 = vadd.f32 %v373_v10, %v286_v44 }
 0x429   :  { %v289_v47 = vmax.f32 %v287_v45, 0.0 }
 0x42b   :  { %v292_v48 = vmul.f32 %v377_v46, %v289_v47 }
 0x42d   :  { %299 = vrot.lane.b32.xlu2 %v292_v48, %s565_s11  ;;  %296 = vrot.lane.b32.xlu1 %v292_v48, %s567_s13 }
 0x42e   :  { %293 = vrot.lane.b32.xlu0 %v292_v48, %s566_s12 }
 0x487   :  { %v300_v57 = vpop.permute.xlu2 %299 }
 0x49f   :  { %v297_v55 = vpop.permute.xlu1 %296 }
 0x4a0   :  { %v294_v53 = vpop.permute.xlu0 %293 }
 0x4a1   :  { %v295_v54 = vadd.f32 %v294_v53, %v292_v48 }
 0x4a3   :  { %v298_v56 = vadd.f32 %v297_v55, %v295_v54 }
 0x4a5   :  { %v301_v58 = vadd.f32 %v300_v57, %v298_v56 }
 0x4a7   :  { %359 = vmatmul.msk.f32.vlgmr.msrb.gmra.mxu1 %vm157_vm1, %v301_v58 }
 0x524   :  { %v330_v60 = vpop.f32.mrf.mxu1 }
 0x525   :  { %v331_v61 = vadd.f32 %v378_v59, %v330_v60 }
 0x527   :  { %333 = vst [vmem:[#allocation13] sm:$0xff] %v331_v61 }
 0x528   :  { %344 = dma.vmem_to_hbm [thread:$0]  %s340_s20, 128, %s342_s23, [#allocation4]  }
 0x529   :  { %555 = dma.done.wait [#allocation4], 128  }
 0x52a   :  { %556 = vsyncadd [#allocation4], 4294967168 }
 0x52b   :  { %349 = vsyncpa [#allocation3], 1 }
 0x52c   :  { %350 = vsyncpa [#allocation6], 1 }
 0x52d   :  { %351 = vsyncpa [#allocation9], 1 }
 0x52e   :  { %352 = vsyncpa [#allocation12], 1 }
 0x52f   :  { %353 = vsyncpa [#allocation4], 1 }

</bundles_post_ra>
